<compile_context>
chip_gen: v5e
topology: v5e:2x2
jax: 0.10.0
libtpu: 0.0.40
codegen_flags: <defaults>
</compile_context>

<pallas_src>
import functools

import jax
import jax.numpy as jnp
from jax.experimental import pallas as pl
from jax.experimental.pallas import tpu as pltpu

HEAD_PAD = 128           # lane-dense fused-head width: [ value | pi (n_actions) | zeros ]
DEFAULT_BLOCK_B = 2048   # batch rows per grid step (VMEM-safe on v5e/v6e/v7x, see header)


def actor_critic_fused_kernel(x_ref, w_ref, out_ref, *, n_actions, state_dim):
    # x_ref: (Bt, state_dim) f32
    # w_ref: (state_dim + 1, HEAD_PAD) f32, last row = fused bias
    # out_ref: (Bt, HEAD_PAD) with layout [ v | softmax(pi) | zeros ]
    x = x_ref[...]
    w = w_ref[...]

    # Tiny-K affine on the VPU (K = state_dim = 4): unrolled broadcast FMAs.
    # Bias comes in through plain arithmetic broadcasting (no jnp.broadcast_to).
    acc = x[:, 0:1] * w[0:1, :] + w[state_dim:state_dim + 1, :]
    for k in range(1, state_dim):
        acc = acc + x[:, k:k + 1] * w[k:k + 1, :]

    # Lane-masked, numerically-stable softmax over the policy lanes [1, 1 + n_actions).
    col = jax.lax.broadcasted_iota(jnp.int32, acc.shape, dimension=1)
    is_pi = jnp.logical_and(col >= 1, col < 1 + n_actions)
    masked = jnp.where(is_pi, acc, -jnp.inf)
    m = jnp.max(masked, axis=-1, keepdims=True)        # finite because n_actions >= 1
    e = jnp.exp(masked - m)                            # exp(-inf) = 0 on non-policy lanes
    s = jnp.sum(e, axis=-1, keepdims=True)
    pi = e * pl.reciprocal(s, approx=False)

    # Single unmasked lane-dense store: lane 0 = value, lanes 1..A = softmax(pi),
    # remaining lanes already 0.  Cast at the store so bf16 output halves HBM writeback.
    out_ref[...] = jnp.where(col == 0, acc, pi).astype(out_ref.dtype)


def prepare_params(params, n_actions, head_pad=HEAD_PAD):
    """Exact algebraic collapse of fc1/fc2 + fusion of value & policy heads + bias
    into a single bias-augmented (state_dim + 1, head_pad) weight (last row = bias).

    Valid ONLY because the PyTorch forward applies no nonlinearity between Linears
    (self.relu exists but is unused).  Run once per parameter update; keep the
    un-collapsed reference check in __main__ as a permanent guard.
    """
    w1, b1, w2, b2, wv, bv, wp, bp = params
    assert n_actions >= 1, "softmax over 0 policy lanes would be NaN"
    assert 1 + n_actions <= head_pad
    state_dim = w1.shape[0]

    w12 = w1 @ w2                        # (state_dim, fc2)
    b12 = b1 @ w2 + b2                   # (1, fc2)
    wv_eff = w12 @ wv                    # (state_dim, 1)
    bv_eff = b12 @ wv + bv               # (1, 1)
    wp_eff = w12 @ wp                    # (state_dim, n_actions)
    bp_eff = b12 @ wp + bp               # (1, n_actions)

    w_aug = jnp.zeros((state_dim + 1, head_pad), jnp.float32)
    w_aug = w_aug.at[:state_dim, 0:1].set(wv_eff)
    w_aug = w_aug.at[:state_dim, 1:1 + n_actions].set(wp_eff)
    w_aug = w_aug.at[state_dim:, 0:1].set(bv_eff)
    w_aug = w_aug.at[state_dim:, 1:1 + n_actions].set(bp_eff)
    return w_aug


def _round_up(x, m):
    return (x + m - 1) // m * m


def actor_critic_forward_packed(state, w_aug, n_actions, *,
                                block_b=DEFAULT_BLOCK_B, out_dtype=jnp.float32):
    """Core entry point: returns the packed lane-dense (B, 128) slab [ v | pi | zeros ].

    Preferred for rollout-scale consumers: index lanes lazily (or fuse sampling /
    log-prob into a downstream kernel) instead of paying extra HBM slice round trips.
    Pass out_dtype=jnp.bfloat16 at large B to halve output HBM writeback.
    """
    assert n_actions >= 1
    B, state_dim = state.shape
    assert w_aug.shape == (state_dim + 1, HEAD_PAD)

    # Batch grid: block the batch axis; the tiny weight gets a constant index_map so
    # it is DMA'd once and stays VMEM-resident across grid steps.
    bt = min(_round_up(max(B, 1), 8), _round_up(block_b, 8))
    b_pad = _round_up(B, bt)
    if b_pad != B:
        state = jnp.pad(state, ((0, b_pad - B), (0, 0)))   # padded rows sliced off below

    kernel = functools.partial(actor_critic_fused_kernel,
                               n_actions=n_actions, state_dim=state_dim)
    out = pl.pallas_call(
        kernel,
        out_shape=jax.ShapeDtypeStruct((b_pad, HEAD_PAD), out_dtype),
        grid=(b_pad // bt,),
        in_specs=[
            pl.BlockSpec((bt, state_dim), lambda i: (i, 0)),             # batch-blocked
            pl.BlockSpec((state_dim + 1, HEAD_PAD), lambda i: (0, 0)),   # VMEM-resident
        ],
        out_specs=pl.BlockSpec((bt, HEAD_PAD), lambda i: (i, 0)),
        compiler_params=pltpu.CompilerParams(
            # Independent batch blocks -> shard across both v7x TCs; no-op on v5e/v6e.
            dimension_semantics=("parallel",),
            # 32 MiB: raises v5e's 16 MiB default, matches v7x default, < review's 48 MiB cap.
            vmem_limit_bytes=32 * 1024 * 1024,
        ),
    )(state, w_aug)
    return out[:B] if b_pad != B else out


def actor_critic_forward(state, w_aug, n_actions, **kw):
    """Module-compatible API: returns (v: (B, 1), pi: (B, n_actions))."""
    out = actor_critic_forward_packed(state, w_aug, n_actions, **kw)
    return out[:, :1], out[:, 1:1 + n_actions]


def init_params(key, state_dim, fc1_dims, fc2_dims, n_actions):
    """PyTorch-style uniform(-1/sqrt(fan_in), 1/sqrt(fan_in)) init.

    Weights stored as (in_features, out_features) so x @ W + b == torch's
    x @ W.T + b with W of shape (out, in)."""
    def linear(k, fan_in, fan_out):
        kw, kb = jax.random.split(k)
        bound = 1.0 / jnp.sqrt(jnp.float32(fan_in))
        w = jax.random.uniform(kw, (fan_in, fan_out), jnp.float32, -bound, bound)
        b = jax.random.uniform(kb, (1, fan_out), jnp.float32, -bound, bound)
        return w, b

    k1, k2, k3, k4 = jax.random.split(key, 4)
    w1, b1 = linear(k1, state_dim, fc1_dims)
    w2, b2 = linear(k2, fc1_dims, fc2_dims)
    wv, bv = linear(k3, fc2_dims, 1)
    wp, bp = linear(k4, fc2_dims, n_actions)
    return (w1, b1, w2, b2, wv, bv, wp, bp)


if __name__ == "__main__":
    # CartPole-v1: state_dim = 4, n_actions = 2; fc1_dims = 1024, fc2_dims = 512.
    state_dim, fc1_dims, fc2_dims, n_actions = 4, 1024, 512, 2

    key = jax.random.PRNGKey(0)
    k_small, k_large, k_params = jax.random.split(key, 3)
    params = init_params(k_params, state_dim, fc1_dims, fc2_dims, n_actions)
    w_aug = prepare_params(params, n_actions)     # once per parameter update

    # Un-collapsed pure-JAX reference, op-for-op identical to the PyTorch forward
    # (no ReLU anywhere -- self.relu is unused).  Permanent guard for the collapse.
    w1, b1, w2, b2, wv, bv, wp, bp = params

    def reference(s):
        h2 = (s @ w1 + b1) @ w2 + b2
        return h2 @ wv + bv, jax.nn.softmax(h2 @ wp + bp, axis=-1)

    # --- Small-batch (per-env-step) path: f32, single grid step. ---
    B = 8
    state = jax.random.normal(k_small, (B, state_dim), dtype=jnp.float32)
    v, pi = actor_critic_forward(state, w_aug, n_actions)
    jax.block_until_ready((v, pi))
    v_ref, pi_ref = reference(state)
    assert v.shape == (B, 1) and pi.shape == (B, n_actions)
    assert jnp.allclose(v, v_ref, atol=2e-4, rtol=2e-4)
    assert jnp.allclose(pi, pi_ref, atol=1e-4, rtol=1e-4)
    assert jnp.allclose(jnp.sum(pi, axis=-1), 1.0, atol=1e-5)

    # --- Rollout-scale path: multi-step parallel batch grid (with padding) and bf16
    #     output to halve HBM writeback of the lane-dense slab.  Value head and policy
    #     probs are validated separately for the reduced-precision output (per review). ---
    BL = 5000    # not a multiple of the 2048-row block -> exercises padding + 3 grid steps
    state_l = jax.random.normal(k_large, (BL, state_dim), dtype=jnp.float32)
    out_l = actor_critic_forward_packed(state_l, w_aug, n_actions,
                                        block_b=2048, out_dtype=jnp.bfloat16)
    jax.block_until_ready(out_l)
    assert out_l.shape == (BL, HEAD_PAD) and out_l.dtype == jnp.bfloat16
    v_l = out_l[:, :1].astype(jnp.float32)
    pi_l = out_l[:, 1:1 + n_actions].astype(jnp.float32)
    v_lr, pi_lr = reference(state_l)
    assert jnp.allclose(v_l, v_lr, atol=2e-2, rtol=2e-2)        # value head, bf16 rounding
    assert jnp.allclose(pi_l, pi_lr, atol=1e-2, rtol=1e-2)      # policy probs, bf16 rounding
    assert jnp.allclose(jnp.sum(pi_l, axis=-1), 1.0, atol=1e-2)

    print("KERNEL_OK")
</pallas_src>

<mosaic_0001>
module attributes {stable_mosaic.version = 11 : i64} {
  func.func @actor_critic_fused_kernel(%arg0: i32, %arg1: memref<8x4xf32, #tpu.memory_space<vmem>>, %arg2: memref<5x128xf32, #tpu.memory_space<vmem>>, %arg3: memref<8x128xf32, #tpu.memory_space<vmem>>) attributes {dimension_semantics = [#tpu.dimension_semantics<parallel>], iteration_bounds = array<i64: 1>, scalar_prefetch = 0 : i64, scratch_operands = 0 : i64, tpu.core_type = #tpu.core_type<tc>, window_params = [{transform_indices = @transform_0, window_bounds = array<i64: 8, 4>}, {pipeline_mode = #tpu.pipeline_mode<synchronous>, transform_indices = @transform_1, window_bounds = array<i64: 5, 128>}, {transform_indices = @transform_2, window_bounds = array<i64: 8, 128>}]} {
    %c0 = arith.constant 0 : index
    %c0_0 = arith.constant 0 : index
    %0 = vector.load %arg1[%c0, %c0_0] : memref<8x4xf32, #tpu.memory_space<vmem>>, vector<8x4xf32>
    %c0_1 = arith.constant 0 : index
    %c0_2 = arith.constant 0 : index
    %1 = vector.load %arg2[%c0_1, %c0_2] : memref<5x128xf32, #tpu.memory_space<vmem>>, vector<5x128xf32>
    %2 = vector.extract_strided_slice %0 {offsets = [0, 0], sizes = [8, 1], strides = [1, 1]} : vector<8x4xf32> to vector<8x1xf32>
    %3 = vector.extract_strided_slice %1 {offsets = [0, 0], sizes = [1, 128], strides = [1, 1]} : vector<5x128xf32> to vector<1x128xf32>
    %4 = vector.broadcast %2 : vector<8x1xf32> to vector<8x128xf32>
    %5 = vector.broadcast %3 : vector<1x128xf32> to vector<8x128xf32>
    %6 = arith.mulf %4, %5 : vector<8x128xf32>
    %7 = vector.extract_strided_slice %1 {offsets = [4, 0], sizes = [1, 128], strides = [1, 1]} : vector<5x128xf32> to vector<1x128xf32>
    %8 = vector.broadcast %7 : vector<1x128xf32> to vector<8x128xf32>
    %9 = arith.addf %6, %8 : vector<8x128xf32>
    %10 = vector.extract_strided_slice %0 {offsets = [0, 1], sizes = [8, 1], strides = [1, 1]} : vector<8x4xf32> to vector<8x1xf32>
    %11 = vector.extract_strided_slice %1 {offsets = [1, 0], sizes = [1, 128], strides = [1, 1]} : vector<5x128xf32> to vector<1x128xf32>
    %12 = vector.broadcast %10 : vector<8x1xf32> to vector<8x128xf32>
    %13 = vector.broadcast %11 : vector<1x128xf32> to vector<8x128xf32>
    %14 = arith.mulf %12, %13 : vector<8x128xf32>
    %15 = arith.addf %9, %14 : vector<8x128xf32>
    %16 = vector.extract_strided_slice %0 {offsets = [0, 2], sizes = [8, 1], strides = [1, 1]} : vector<8x4xf32> to vector<8x1xf32>
    %17 = vector.extract_strided_slice %1 {offsets = [2, 0], sizes = [1, 128], strides = [1, 1]} : vector<5x128xf32> to vector<1x128xf32>
    %18 = vector.broadcast %16 : vector<8x1xf32> to vector<8x128xf32>
    %19 = vector.broadcast %17 : vector<1x128xf32> to vector<8x128xf32>
    %20 = arith.mulf %18, %19 : vector<8x128xf32>
    %21 = arith.addf %15, %20 : vector<8x128xf32>
    %22 = vector.extract_strided_slice %0 {offsets = [0, 3], sizes = [8, 1], strides = [1, 1]} : vector<8x4xf32> to vector<8x1xf32>
    %23 = vector.extract_strided_slice %1 {offsets = [3, 0], sizes = [1, 128], strides = [1, 1]} : vector<5x128xf32> to vector<1x128xf32>
    %24 = vector.broadcast %22 : vector<8x1xf32> to vector<8x128xf32>
    %25 = vector.broadcast %23 : vector<1x128xf32> to vector<8x128xf32>
    %26 = arith.mulf %24, %25 : vector<8x128xf32>
    %27 = arith.addf %21, %26 : vector<8x128xf32>
    %28 = tpu.iota {dimensions = array<i32: 1>} : vector<8x128xi32>
    %c1_i32 = arith.constant 1 : i32
    %29 = vector.broadcast %c1_i32 : i32 to vector<8x128xi32>
    %30 = arith.cmpi sge, %28, %29 : vector<8x128xi32>
    %c3_i32 = arith.constant 3 : i32
    %31 = vector.broadcast %c3_i32 : i32 to vector<8x128xi32>
    %32 = arith.cmpi slt, %28, %31 : vector<8x128xi32>
    %33 = arith.andi %30, %32 : vector<8x128xi1>
    %cst = arith.constant 0xFF800000 : f32
    %34 = vector.broadcast %cst : f32 to vector<8x128xf32>
    %35 = arith.select %33, %27, %34 : vector<8x128xi1>, vector<8x128xf32>
    %cst_3 = arith.constant dense<0xFF800000> : vector<8xf32>
    %36 = vector.multi_reduction <maximumf>, %35, %cst_3 [1] : vector<8x128xf32> to vector<8xf32>
    %37 = vector.shape_cast %36 : vector<8xf32> to vector<8x1xf32>
    %38 = vector.broadcast %37 : vector<8x1xf32> to vector<8x128xf32>
    %39 = arith.subf %35, %38 : vector<8x128xf32>
    %40 = math.exp %39 : vector<8x128xf32>
    %cst_4 = arith.constant dense<0.000000e+00> : vector<8xf32>
    %41 = vector.multi_reduction <add>, %40, %cst_4 [1] : vector<8x128xf32> to vector<8xf32>
    %42 = vector.shape_cast %41 : vector<8xf32> to vector<8x1xf32>
    %43 = tpu.reciprocal %42 : vector<8x1xf32> -> vector<8x1xf32>
    %44 = vector.broadcast %43 : vector<8x1xf32> to vector<8x128xf32>
    %45 = arith.mulf %40, %44 : vector<8x128xf32>
    %c0_i32 = arith.constant 0 : i32
    %46 = vector.broadcast %c0_i32 : i32 to vector<8x128xi32>
    %47 = arith.cmpi eq, %28, %46 : vector<8x128xi32>
    %48 = arith.select %47, %27, %45 : vector<8x128xi1>, vector<8x128xf32>
    %c0_5 = arith.constant 0 : index
    %c0_6 = arith.constant 0 : index
    %49 = vector.load %arg3[%c0_5, %c0_6] : memref<8x128xf32, #tpu.memory_space<vmem>>, vector<8x128xf32>
    tpu.vector_store %arg3[%c0_5, %c0_6], %48 {strides = array<i32>} : memref<8x128xf32, #tpu.memory_space<vmem>>, vector<8x128xf32>,
    return
  }
  func.func @transform_0(%arg0: i32) -> (i32, i32) {
    %c0_i32 = arith.constant 0 : i32
    %c0_i32_0 = arith.constant 0 : i32
    return %arg0, %c0_i32 : i32, i32
  }
  func.func @transform_1(%arg0: i32) -> (i32, i32) {
    %c0_i32 = arith.constant 0 : i32
    %c0_i32_0 = arith.constant 0 : i32
    %c0_i32_1 = arith.constant 0 : i32
    return %c0_i32, %c0_i32_0 : i32, i32
  }
  func.func @transform_2(%arg0: i32) -> (i32, i32) {
    %c0_i32 = arith.constant 0 : i32
    %c0_i32_0 = arith.constant 0 : i32
    return %arg0, %c0_i32 : i32, i32
  }
}

</mosaic_0001>

<bundles_post_ra>
// kernel: tpu_custom_call.1
= control target key start
LH: loop header
LB: loop body
LE: loop exit
PB: predicated region body
PF: predicated region fallthrough
CT: control target
= control target key end

     0   :  { %v131_v1 = vmov 0   ;;  %v132_v2 = vmov 2   ;;  %s160_s0 = inlined_call_operand.vmem [shape: f32[8,4], index: 0, kind: input, shape index: {}]   ;;  %s161_s1 = inlined_call_operand.vmem [shape: f32[5,128], index: 1, kind: input, shape index: {}]   ;;  %s162_s2 = inlined_call_operand.hbm [shape: f32[8,128], index: 2, kind: output, shape index: {}]  }
   0x1   :  { %v12_v0 = vld [vmem:[%s160_s0] sm:$0xff]  ;;  %96 = vset.pattern.permute.xlu0 %v131_v1  ;;  %98 = vset.pattern.permute.xlu1 %v132_v2 }
   0x2   :  { %7 = vsyncpa [#allocation3], 0  ;;  %16 = vperm.xlu0 %96, %v12_v0   ;;  %31 = vperm.xlu1 %98, %v12_v0   ;;  %v133_v3 = vmov 1   ;;  %v134_v4 = vmov 3   ;;  %v13_v5 = vld [vmem:[%s161_s1] sm:$0x1f]  ;;  %v44_v9 = vlaneseq }
   0x3   :  { %v19_v8 = vperm.slane %v13_v5, 0  ;;  %v21_v10 = vperm.slane %v13_v5, 4  ;;  %v27_v12 = vperm.slane %v13_v5, 1  ;;  %v34_v14 = vperm.slane %v13_v5, 2  ;;  %s135_s0 = smov [#allocation2]   ;;  %s82_s15 = sshll.u32 %s162_s2, 4  ;;  %s83_s15 = int_to_ptr.hbm [resolvable:$true] %s82_s15 }
   0x4   :  { %v45_v13 = vand.u32 127, %v44_v9  ;;  %v41_v15 = vperm.slane %v13_v5, 3  ;;  %s80_s1 = sshll.u32 %s135_s0, 4  ;;  %s81_s1 = int_to_ptr.vmem [resolvable:$true] %s80_s1 }
   0x6   :  { %vm46_vm0 = vcmp.ge.s32.totalorder %v45_v13, 1  ;;  %vm47_vm1 = vcmp.lt.s32.totalorder %v45_v13, 3  ;;  %vm72_vm7 = vcmp.eq.s32.totalorder %v45_v13, 0 }
   0x7   :  { %vm48_vm2 = vmand %vm46_vm0, %vm47_vm1 }
   0xa   :  { %97 = vset.pattern.permute.xlu0 %v133_v3  ;;  %99 = vset.pattern.permute.xlu1 %v134_v4 }
   0xb   :  { %24 = vperm.xlu0 %97, %v12_v0   ;;  %38 = vperm.xlu1 %99, %v12_v0  }
  0x13   :  { %100 = vset.pattern.permute.xlu0 %v134_v4 }
  0x74   :  { %v17_v6 = vpop.permute.xlu0 %16  ;;  %v32_v7 = vpop.permute.xlu1 %31 }
  0x75   :  { %v20_v11 = vmul.f32 %v19_v8, %v17_v6  ;;  %v35_v20 = vmul.f32 %v34_v14, %v32_v7 }
  0x77   :  { %v22_v18 = vadd.f32 %v21_v10, %v20_v11 }
  0x7d   :  { %v25_v16 = vpop.permute.xlu0 %24  ;;  %v39_v17 = vpop.permute.xlu1 %38 }
  0x7e   :  { %v28_v19 = vmul.f32 %v27_v12, %v25_v16  ;;  %v42_v22 = vmul.f32 %v41_v15, %v39_v17 }
  0x80   :  { %v29_v21 = vadd.f32 %v28_v19, %v22_v18 }
  0x82   :  { %v36_v23 = vadd.f32 %v35_v20, %v29_v21 }
  0x84   :  { %v43_v24 = vadd.f32 %v42_v22, %v36_v23 }
  0x86   :  { %v49_v25 = vsel %vm48_vm2, %v43_v24, -inf }
  0x87   :  { %50 = vmax.xlane.f32.xlu2 %v49_v25 }
  0xfa   :  { %v51_v26 = vpop.xlane.xlu2 %50 }
  0xfb   :  { %v52_v27 = vsub.f32 %v49_v25, %v51_v26 }
  0xfd   :  { %v53_v28 = vmul.f32 1.442695, %v52_v27 }
  0xff   :  { %101 = vpow2.f32 %v53_v28 }
 0x105   :  { %v102_v29 = vpop.eup %101 }
 0x106   :  { %55 = vadd.xlane.f32.xlu2 %v102_v29 }
 0x179   :  { %v56_v30 = vpop.xlane.xlu2 %55 }
 0x17a   :  { %103 = vrcp.f32 %v56_v30  ;;  %v68_v34 = vand.u32 2147483648, %v56_v30  ;;  %v66_v36 = vand.u32 2147483647, %v56_v30  ;;  %vm62_vm4 = vweird.f32 %v56_v30 }
 0x17c   :  { %v69_v38 = vor.u32 1.1754944e-38, %v68_v34  ;;  %vm67_vm6 = vcmp.eq.f32.partialorder %v66_v36, 8.507059e+37 }
 0x180   :  { %v104_v31 = vpop.eup %103 }
 0x181   :  { %v58_v32 = vmul.f32 %v104_v31, %v56_v30  ;;  %vm63_vm3 = vweird.f32 %v104_v31 }
 0x182   :  { %vm64_vm5 = vmor %vm62_vm4, %vm63_vm3 }
 0x183   :  { %v59_v33 = vsub.f32 1.0, %v58_v32 }
 0x185   :  { %v60_v35 = vmul.f32 %v104_v31, %v59_v33 }
 0x187   :  { %v61_v37 = vadd.f32 %v104_v31, %v60_v35 }
 0x189   :  { %v65_v39 = vsel %vm64_vm5, %v104_v31, %v61_v37 }
 0x18a   :  { %v70_v40 = vsel %vm67_vm6, %v69_v38, %v65_v39 }
 0x18b   :  { %v71_v41 = vmul.f32 %v102_v29, %v70_v40 }
 0x18d   :  { %v73_v42 = vsel %vm72_vm7, %v43_v24, %v71_v41 }
 0x18e   :  { %74 = vst [vmem:[#allocation2] sm:$0xff] %v73_v42 }
 0x18f   :  { %85 = dma.vmem_to_hbm [thread:$0]  %s81_s1, 128, %s83_s15, [#allocation3]  }
 0x190   :  { %129 = dma.done.wait [#allocation3], 128  }
 0x191   :  { %130 = vsyncadd [#allocation3], 4294967168 }
 0x192   :  { %90 = vsyncpa [#allocation3], 1 }

</bundles_post_ra>
